<compile_context>
chip_gen: v6e
topology: v6e:2x2x1
jax: 0.10.0
libtpu: 0.0.40
codegen_flags: <defaults>
</compile_context>

<pallas_src>
import functools

import jax
import jax.numpy as jnp
from jax import lax
from jax.experimental import pallas as pl
from jax.experimental.pallas import tpu as pltpu


_UNROLL_LAYER_LIMIT = 16  # static unroll below this, lax.fori_loop above


# ----------------------------------------------------------------------------
# Fused Pallas kernel: all layers applied to one resident activation tile
# ----------------------------------------------------------------------------
def _fused_stack_kernel(*refs, n_layers, with_bias):
    # with_bias:  refs = (x_ref, w_ref, b_ref, o_ref)
    # no bias  :  refs = (x_ref, w_ref, o_ref)
    if with_bias:
        x_ref, w_ref, b_ref, o_ref = refs
    else:
        x_ref, w_ref, o_ref = refs
        b_ref = None

    x = x_ref[...]  # (TM, DP), stays on-chip across the whole layer stack

    def layer(l, acc, keep_f32=False):
        # bf16 (or f32) operands, f32 accumulation on the MXU.
        y = jnp.dot(acc, w_ref[l], preferred_element_type=jnp.float32)
        if with_bias:
            y = y + b_ref[l]  # (1, DP) f32 bias broadcasts over the TM rows
        return y if keep_f32 else y.astype(x.dtype)

    if n_layers <= _UNROLL_LAYER_LIMIT:
        acc = x
        for l in range(n_layers):  # compile-time constant L -> unrolled
            acc = layer(l, acc, keep_f32=(l == n_layers - 1))
    else:
        # Large stacks: rolled loop with a dynamic index into the weight stack.
        acc = lax.fori_loop(0, n_layers, lambda l, a: layer(l, a), x)

    o_ref[...] = acc.astype(o_ref.dtype)


# ----------------------------------------------------------------------------
# TemporalModel forward (parameter container + layout glue in plain JAX)
# ----------------------------------------------------------------------------
def init_temporal_model(config, key):
    """Deterministic per-layer (W, b) parameters."""
    d = config["other_dim"]
    params = []
    for _ in range(config["n_layers_temporal"]):
        kw, kb, key = jax.random.split(key, 3)
        w = jax.random.normal(kw, (d, d), dtype=jnp.float32) / jnp.sqrt(d)
        b = jax.random.normal(kb, (d,), dtype=jnp.float32) * 0.01
        params.append((w, b))
    return params


def _pick_pack_width(n_layers):
    """Pack target lane width: 256 on v6e/v7x only when the stack is MXU-bound."""
    try:
        kind = jax.devices()[0].device_kind.lower()
    except Exception:  # pragma: no cover - device query is best-effort
        kind = ""
    if n_layers >= 8 and ("v6" in kind or "v7" in kind):
        return 256  # fills the 256-wide MXU; only worth it when compute-bound
    return 128      # v5e MXU is 128-wide; also best when memory-bound


def temporal_model_forward(
    params,
    x,
    transpose=False,
    with_bias=True,
    tm=1024,
    compute_dtype=jnp.bfloat16,
    pack_lanes=None,
):
    """Mirrors TemporalModel.forward; the whole layer stack runs in one kernel."""
    n_time, n_samples, n_space, D = x.shape
    L = len(params)
    if L == 0:
        return x
    out_dtype = x.dtype
    M = n_time * n_samples * n_space

    # ---- lane packing: fold p consecutive rows into one wide row ------------
    if pack_lanes is None:
        pack_lanes = _pick_pack_width(L)
    if D < pack_lanes and pack_lanes % D == 0:
        p = pack_lanes // D
    else:
        p = 1
        # TODO(synk): if D is not a divisor of 128 (e.g. 48) this layout is
        # lane-sparse (masked stores); pad D up to a divisor of 128 if it matters.
    DP = p * D

    # ---- wrapper-side weight prep: hoisted transpose + block-diagonal -------
    eye_p = jnp.eye(p, dtype=jnp.float32)
    ws, bs = [], []
    for (w, b) in params:
        wt = jnp.transpose(w) if transpose else w            # transpose once
        wt = wt.astype(jnp.float32)
        wp = jnp.kron(eye_p, wt) if p > 1 else wt            # (DP, DP)
        ws.append(wp.astype(compute_dtype))                  # bf16 weights
        bs.append(jnp.tile(b.astype(jnp.float32), p))        # f32 bias (tiny)
    w_stack = jnp.stack(ws)                                  # (L, DP, DP)
    b_stack = jnp.stack(bs)[:, None, :]                      # (L, 1, DP)

    # ---- rows: pad only to a multiple of p (<= p-1 rows), then pack ---------
    x2d = x.reshape(M, D)
    p_pad = (-M) % p
    if p_pad:
        x2d = jnp.pad(x2d, ((0, p_pad), (0, 0)))             # tiny (< p rows)
    Mr = (M + p_pad) // p                                     # packed row count
    xp = x2d.reshape(Mr, DP)                                  # lane-dense view
    if xp.dtype != compute_dtype:
        xp = xp.astype(compute_dtype)                         # bf16 activations

    # ---- tile size: multiple of 8, >= 2 grid steps when possible (v7x) ------
    tm = max(8, (int(tm) // 8) * 8)                           # clamp user tm
    if Mr > tm:
        tm_eff = tm
    elif Mr >= 16 and Mr % 8 == 0:
        tm_eff = max(8, ((Mr // 2 + 7) // 8) * 8)             # split -> grid >= 2
    else:
        tm_eff = Mr                                           # full-extent block
    grid = (pl.cdiv(Mr, tm_eff),)                             # ragged tail masked

    # ---- cost / VMEM budget ---------------------------------------------------
    in_bytes = jnp.dtype(compute_dtype).itemsize
    out_bytes = jnp.dtype(out_dtype).itemsize
    w_bytes = int(w_stack.size) * w_stack.dtype.itemsize
    b_bytes = int(b_stack.size) * b_stack.dtype.itemsize if with_bias else 0
    cost = pl.CostEstimate(
        flops=2 * Mr * DP * DP * L,
        transcendentals=0,
        bytes_accessed=Mr * DP * (in_bytes + out_bytes) + w_bytes + b_bytes,
    )
    tile_bytes = tm_eff * DP * (in_bytes + out_bytes)         # streamed tiles
    vmem_need = 2 * tile_bytes + 2 * (w_bytes + b_bytes) + 8 * tm_eff * DP
    vmem_limit = int(min(100 * 2**20, max(32 * 2**20, 2 * vmem_need)))

    kernel = functools.partial(
        _fused_stack_kernel, n_layers=L, with_bias=with_bias
    )

    def _call(const_pipeline_mode):
        in_specs = [pl.BlockSpec((tm_eff, DP), lambda i: (i, 0))]       # x tile
        args = [xp]
        in_specs.append(
            pl.BlockSpec((L, DP, DP), lambda i: (0, 0, 0),
                         pipeline_mode=const_pipeline_mode)             # weights
        )
        args.append(w_stack)
        if with_bias:
            in_specs.append(
                pl.BlockSpec((L, 1, DP), lambda i: (0, 0, 0),
                             pipeline_mode=const_pipeline_mode)         # bias
            )
            args.append(b_stack)
        return pl.pallas_call(
            kernel,
            out_shape=jax.ShapeDtypeStruct((Mr, DP), out_dtype),
            grid_spec=pltpu.PrefetchScalarGridSpec(
                num_scalar_prefetch=0,
                grid=grid,
                in_specs=in_specs,
                out_specs=pl.BlockSpec((tm_eff, DP), lambda i: (i, 0)),
            ),
            compiler_params=pltpu.CompilerParams(
                dimension_semantics=("parallel",),
                vmem_limit_bytes=vmem_limit,
            ),
            cost_estimate=cost,
        )(*args)

    try:
        # Constant-index weights/bias: single VMEM buffer (halves their footprint).
        out = _call(pl.Buffered(1))
    except Exception:
        # Fallback if this jax version rejects single-buffered pipeline_mode.
        out = _call(None)

    out = out.reshape(Mr * p, D)
    if p_pad:
        out = out[:M]
    return out.reshape(n_time, n_samples, n_space, D)


# ----------------------------------------------------------------------------
# Pure-JAX reference for a sanity check
# ----------------------------------------------------------------------------
def temporal_model_ref(params, x, transpose=False, with_bias=True):
    for (w, b) in params:
        wt = w.T if transpose else w
        y = jnp.einsum("tnsd,de->tnse", x, wt)
        if with_bias:
            y = y + b
        x = y
    return x


if __name__ == "__main__":
    config = {"n_layers_temporal": 2, "other_dim": 32}

    n_time, n_samples, n_space, other_dim = 8, 2, 16, config["other_dim"]

    key = jax.random.PRNGKey(0)
    kx, kp = jax.random.split(key)
    x = jax.random.normal(
        kx, (n_time, n_samples, n_space, other_dim), dtype=jnp.float32
    )
    params = init_temporal_model(config, kp)

    ref = temporal_model_ref(params, x, transpose=False, with_bias=True)

    # Exact path (f32 compute) -> tight tolerance vs the f32 reference.
    out_f32 = jax.block_until_ready(
        temporal_model_forward(
            params, x, transpose=False, with_bias=True,
            compute_dtype=jnp.float32,
        )
    )
    assert out_f32.shape == x.shape
    assert jnp.allclose(out_f32, ref, atol=1e-4, rtol=1e-4)

    # Fast path (default): bf16 I/O + bf16 MXU operands, f32 accumulation.
    out_bf16 = jax.block_until_ready(
        temporal_model_forward(params, x, transpose=False, with_bias=True)
    )
    assert out_bf16.shape == x.shape
    assert jnp.allclose(out_bf16, ref, atol=5e-2, rtol=5e-2)

    # Also exercise the transpose / no-bias code paths once.
    out2 = jax.block_until_ready(
        temporal_model_forward(params, x, transpose=True, with_bias=False)
    )
    ref2 = temporal_model_ref(params, x, transpose=True, with_bias=False)
    assert jnp.allclose(out2, ref2, atol=5e-2, rtol=5e-2)

    print("KERNEL_OK")
</pallas_src>

<mosaic_0001>
module attributes {stable_mosaic.version = 11 : i64} {
  func.func @_fused_stack_kernel(%arg0: i32, %arg1: memref<32x128xf32, #tpu.memory_space<vmem>>, %arg2: memref<2x128x128xf32, #tpu.memory_space<vmem>>, %arg3: memref<2x1x128xf32, #tpu.memory_space<vmem>>, %arg4: memref<32x128xf32, #tpu.memory_space<vmem>>) attributes {dimension_semantics = [#tpu.dimension_semantics<parallel>], iteration_bounds = array<i64: 2>, scalar_prefetch = 0 : i64, scratch_operands = 0 : i64, tpu.core_type = #tpu.core_type<tc>, window_params = [{transform_indices = @transform_0, window_bounds = array<i64: 32, 128>}, {pipeline_mode = #tpu.pipeline_mode<synchronous>, transform_indices = @transform_1, window_bounds = array<i64: 2, 128, 128>}, {pipeline_mode = #tpu.pipeline_mode<synchronous>, transform_indices = @transform_2, window_bounds = array<i64: 2, 1, 128>}, {transform_indices = @transform_3, window_bounds = array<i64: 32, 128>}]} {
    %c0 = arith.constant 0 : index
    %c0_0 = arith.constant 0 : index
    %0 = vector.load %arg1[%c0, %c0_0] : memref<32x128xf32, #tpu.memory_space<vmem>>, vector<32x128xf32>
    %c0_1 = arith.constant 0 : index
    %c0_2 = arith.constant 0 : index
    %c0_3 = arith.constant 0 : index
    %1 = vector.load %arg2[%c0_1, %c0_2, %c0_3] : memref<2x128x128xf32, #tpu.memory_space<vmem>>, vector<1x128x128xf32>
    %2 = vector.shape_cast %1 : vector<1x128x128xf32> to vector<128x128xf32>
    %cst = arith.constant dense<0.000000e+00> : vector<32x128xf32>
    %3 = tpu.matmul %0, %2, %cst {dimension_numbers = #tpu.dot_dimension_numbers<[1], [0], [0], [1], [0, 0, 1, 1], [], []>} : vector<32x128xf32>, vector<128x128xf32>, vector<32x128xf32> -> vector<32x128xf32>
    %c0_4 = arith.constant 0 : index
    %c0_5 = arith.constant 0 : index
    %c0_6 = arith.constant 0 : index
    %4 = vector.load %arg3[%c0_4, %c0_5, %c0_6] : memref<2x1x128xf32, #tpu.memory_space<vmem>>, vector<1x1x128xf32>
    %5 = vector.shape_cast %4 : vector<1x1x128xf32> to vector<1x128xf32>
    %6 = vector.broadcast %5 : vector<1x128xf32> to vector<32x128xf32>
    %7 = arith.addf %3, %6 : vector<32x128xf32>
    %c1 = arith.constant 1 : index
    %c0_7 = arith.constant 0 : index
    %c0_8 = arith.constant 0 : index
    %8 = vector.load %arg2[%c1, %c0_7, %c0_8] : memref<2x128x128xf32, #tpu.memory_space<vmem>>, vector<1x128x128xf32>
    %9 = vector.shape_cast %8 : vector<1x128x128xf32> to vector<128x128xf32>
    %cst_9 = arith.constant dense<0.000000e+00> : vector<32x128xf32>
    %10 = tpu.matmul %7, %9, %cst_9 {dimension_numbers = #tpu.dot_dimension_numbers<[1], [0], [0], [1], [0, 0, 1, 1], [], []>} : vector<32x128xf32>, vector<128x128xf32>, vector<32x128xf32> -> vector<32x128xf32>
    %c1_10 = arith.constant 1 : index
    %c0_11 = arith.constant 0 : index
    %c0_12 = arith.constant 0 : index
    %11 = vector.load %arg3[%c1_10, %c0_11, %c0_12] : memref<2x1x128xf32, #tpu.memory_space<vmem>>, vector<1x1x128xf32>
    %12 = vector.shape_cast %11 : vector<1x1x128xf32> to vector<1x128xf32>
    %13 = vector.broadcast %12 : vector<1x128xf32> to vector<32x128xf32>
    %14 = arith.addf %10, %13 : vector<32x128xf32>
    %c0_13 = arith.constant 0 : index
    %c0_14 = arith.constant 0 : index
    %15 = vector.load %arg4[%c0_13, %c0_14] : memref<32x128xf32, #tpu.memory_space<vmem>>, vector<32x128xf32>
    tpu.vector_store %arg4[%c0_13, %c0_14], %14 {strides = array<i32>} : memref<32x128xf32, #tpu.memory_space<vmem>>, vector<32x128xf32>,
    return
  }
  func.func @transform_0(%arg0: i32) -> (i32, i32) {
    %c0_i32 = arith.constant 0 : i32
    %c0_i32_0 = arith.constant 0 : i32
    return %arg0, %c0_i32 : i32, i32
  }
  func.func @transform_1(%arg0: i32) -> (i32, i32, i32) {
    %c0_i32 = arith.constant 0 : i32
    %c0_i32_0 = arith.constant 0 : i32
    %c0_i32_1 = arith.constant 0 : i32
    %c0_i32_2 = arith.constant 0 : i32
    return %c0_i32, %c0_i32_0, %c0_i32_1 : i32, i32, i32
  }
  func.func @transform_2(%arg0: i32) -> (i32, i32, i32) {
    %c0_i32 = arith.constant 0 : i32
    %c0_i32_0 = arith.constant 0 : i32
    %c0_i32_1 = arith.constant 0 : i32
    %c0_i32_2 = arith.constant 0 : i32
    return %c0_i32, %c0_i32_0, %c0_i32_1 : i32, i32, i32
  }
  func.func @transform_3(%arg0: i32) -> (i32, i32) {
    %c0_i32 = arith.constant 0 : i32
    %c0_i32_0 = arith.constant 0 : i32
    return %arg0, %c0_i32 : i32, i32
  }
}

module attributes {stable_mosaic.version = 11 : i64} {
  func.func @_fused_stack_kernel(%arg0: i32, %arg1: memref<32x128xf32, #tpu.memory_space<vmem>>, %arg2: memref<2x128x128xf32, #tpu.memory_space<vmem>>, %arg3: memref<2x1x128xf32, #tpu.memory_space<vmem>>, %arg4: memref<32x128xf32, #tpu.memory_space<vmem>>) attributes {dimension_semantics = [#tpu.dimension_semantics<parallel>], iteration_bounds = array<i64: 2>, scalar_prefetch = 0 : i64, scratch_operands = 0 : i64, tpu.core_type = #tpu.core_type<tc>, window_params = [{transform_indices = @transform_0, window_bounds = array<i64: 32, 128>}, {pipeline_mode = #tpu.pipeline_mode<synchronous>, transform_indices = @transform_1, window_bounds = array<i64: 2, 128, 128>}, {pipeline_mode = #tpu.pipeline_mode<synchronous>, transform_indices = @transform_2, window_bounds = array<i64: 2, 1, 128>}, {transform_indices = @transform_3, window_bounds = array<i64: 32, 128>}]} {
    %c0 = arith.constant 0 : index
    %c0_0 = arith.constant 0 : index
    %0 = vector.load %arg1[%c0, %c0_0] : memref<32x128xf32, #tpu.memory_space<vmem>>, vector<32x128xf32>
    %c0_1 = arith.constant 0 : index
    %c0_2 = arith.constant 0 : index
    %c0_3 = arith.constant 0 : index
    %1 = vector.load %arg2[%c0_1, %c0_2, %c0_3] : memref<2x128x128xf32, #tpu.memory_space<vmem>>, vector<1x128x128xf32>
    %2 = vector.shape_cast %1 : vector<1x128x128xf32> to vector<128x128xf32>
    %cst = arith.constant dense<0.000000e+00> : vector<32x128xf32>
    %3 = tpu.matmul %0, %2, %cst {dimension_numbers = #tpu.dot_dimension_numbers<[1], [0], [0], [1], [0, 0, 1, 1], [], []>} : vector<32x128xf32>, vector<128x128xf32>, vector<32x128xf32> -> vector<32x128xf32>
    %c0_4 = arith.constant 0 : index
    %c0_5 = arith.constant 0 : index
    %c0_6 = arith.constant 0 : index
    %4 = vector.load %arg3[%c0_4, %c0_5, %c0_6] : memref<2x1x128xf32, #tpu.memory_space<vmem>>, vector<1x1x128xf32>
    %5 = vector.shape_cast %4 : vector<1x1x128xf32> to vector<1x128xf32>
    %6 = vector.broadcast %5 : vector<1x128xf32> to vector<32x128xf32>
    %7 = arith.addf %3, %6 : vector<32x128xf32>
    %c1 = arith.constant 1 : index
    %c0_7 = arith.constant 0 : index
    %c0_8 = arith.constant 0 : index
    %8 = vector.load %arg2[%c1, %c0_7, %c0_8] : memref<2x128x128xf32, #tpu.memory_space<vmem>>, vector<1x128x128xf32>
    %9 = vector.shape_cast %8 : vector<1x128x128xf32> to vector<128x128xf32>
    %cst_9 = arith.constant dense<0.000000e+00> : vector<32x128xf32>
    %10 = tpu.matmul %7, %9, %cst_9 {dimension_numbers = #tpu.dot_dimension_numbers<[1], [0], [0], [1], [0, 0, 1, 1], [], []>} : vector<32x128xf32>, vector<128x128xf32>, vector<32x128xf32> -> vector<32x128xf32>
    %c1_10 = arith.constant 1 : index
    %c0_11 = arith.constant 0 : index
    %c0_12 = arith.constant 0 : index
    %11 = vector.load %arg3[%c1_10, %c0_11, %c0_12] : memref<2x1x128xf32, #tpu.memory_space<vmem>>, vector<1x1x128xf32>
    %12 = vector.shape_cast %11 : vector<1x1x128xf32> to vector<1x128xf32>
    %13 = vector.broadcast %12 : vector<1x128xf32> to vector<32x128xf32>
    %14 = arith.addf %10, %13 : vector<32x128xf32>
    %c0_13 = arith.constant 0 : index
    %c0_14 = arith.constant 0 : index
    %15 = vector.load %arg4[%c0_13, %c0_14] : memref<32x128xf32, #tpu.memory_space<vmem>>, vector<32x128xf32>
    tpu.vector_store %arg4[%c0_13, %c0_14], %14 {strides = array<i32>} : memref<32x128xf32, #tpu.memory_space<vmem>>, vector<32x128xf32>,
    return
  }
  func.func @transform_0(%arg0: i32) -> (i32, i32) {
    %c0_i32 = arith.constant 0 : i32
    %c0_i32_0 = arith.constant 0 : i32
    return %arg0, %c0_i32 : i32, i32
  }
  func.func @transform_1(%arg0: i32) -> (i32, i32, i32) {
    %c0_i32 = arith.constant 0 : i32
    %c0_i32_0 = arith.constant 0 : i32
    %c0_i32_1 = arith.constant 0 : i32
    %c0_i32_2 = arith.constant 0 : i32
    return %c0_i32, %c0_i32_0, %c0_i32_1 : i32, i32, i32
  }
  func.func @transform_2(%arg0: i32) -> (i32, i32, i32) {
    %c0_i32 = arith.constant 0 : i32
    %c0_i32_0 = arith.constant 0 : i32
    %c0_i32_1 = arith.constant 0 : i32
    %c0_i32_2 = arith.constant 0 : i32
    return %c0_i32, %c0_i32_0, %c0_i32_1 : i32, i32, i32
  }
  func.func @transform_3(%arg0: i32) -> (i32, i32) {
    %c0_i32 = arith.constant 0 : i32
    %c0_i32_0 = arith.constant 0 : i32
    return %arg0, %c0_i32 : i32, i32
  }
}

</mosaic_0001>

<bundles_post_ra>
// kernel: tpu_custom_call.1
= control target key start
LH: loop header
LB: loop body
LE: loop exit
PB: predicated region body
PF: predicated region fallthrough
CT: control target
= control target key end

     0   :  { %8 = vsyncpa [#allocation3], 0  ;;  %s1077_s0 = inlined_call_operand.hbm [shape: f32[64,128], index: 0, kind: input, shape index: {}]   ;;  %s1078_s1 = inlined_call_operand.hbm [shape: f32[2,128,128], index: 1, kind: input, shape index: {}]   ;;  %s1079_s2 = inlined_call_operand.vmem [shape: f32[2,1,128], index: 2, kind: input, shape index: {}]   ;;  %s1080_s3 = inlined_call_operand.hbm [shape: f32[64,128], index: 3, kind: output, shape index: {}]  }
   0x1   :  { %10 = vsyncpa [#allocation3 + $0x1], 0 }
   0x2   :  { %11 = vsyncpa [#allocation6], 0 }
   0x3   :  { %12 = vsyncpa [#allocation4], 0 }
   0x4   :  { %14 = vsyncpa [#allocation4 + $0x1], 0  ;;  %s878_s12 = smov 0   ;;  %s880_s13 = smov 0  }
   0x5   :  { %s882_s14 = smov 0   ;;  %s884_s15 = smov 0  }
   0x6 LB: > { %s899_s16 = sadd.s32 4294967295, %s849_s15   ;;  %s529_s17 = sadd.s32 4294967294, %s849_s15   ;;  %s849_s15 = sphi %s884_s15, %s1102_s15   ;;  %s845_s14 = sphi %s882_s14, %s1101_s14   ;;  %s841_s13 = sphi %s880_s13, %s1100_s13   ;;  %s837_s12 = sphi %s878_s12, %s1099_s12  }
   0x7   : > { %p40_p0 = scmp.ne.s32.totalorder %s841_s13, %s837_s12  ;;  %p1081_p1 = scmp.eq.s32.totalorder %s899_s16, 0 }
   0x8   : > { %p112_p3 = scmp.eq.s32.totalorder %s529_s17, 1  ;;  %p530_p5 = scmp.ge.s32.totalorder %s849_s15, 1 }
   0x9   : > { %p908_p4 = por %p1081_p1, %p40_p0  ;;  %p119_p7 = scmp.lt.s32.totalorder %s849_s15, 3 }
   0xa   : > { %p913_p6 = por %p112_p3, %p40_p0  ;;  %s851_s21 = smov [#allocation5]  }
   0xb   : > { %s1085_s18 = scalar_select %p908_p4, 1, 0 }
   0xc   : > { %s1086_s19 = scalar_select %p913_p6, 1, 0 }
   0xd   : > { %p918_p8 = pnand %p530_p5, %p119_p7  ;;  %s131_s22 = sshll.u32 %s851_s21, 4  ;;  %s132_s22 = int_to_ptr.vmem [resolvable:$true] %s131_s22 }
   0xe   : > { %s932_s24 = sadd.s32 1, %s849_s15   ;;  %s27_s25 = sadd.s32 1, %s845_s14 }
   0xf   : > { %s1087_s20 = scalar_select %p918_p8, 1, 0 }
  0x10   : > { %p674_p9 = pneg %p918_p8  ;;  %s24_s26 = ssub.s32 %s849_s15, %s932_s24 }
  0x11   : > { %s738_s27 = scalar_lea.vmem %s132_s22, 4096  ;;  %p746_p5 = scmp.lt.s32.totalorder %s132_s22, %s132_s22 }
  0x12   : > { %p927_p11 = pnand %p674_p9, %p1081_p1  ;;  %p739_p13 = scmp.ne.s32.totalorder %s132_s22, %s738_s27 }
  0x13   : > { %p747_p7 = scmp.lt.s32.totalorder %s738_s27, %s738_s27 }
  0x14   : > { %p729_p12 = pneg %p927_p11 }
  0x15   : > { %p748_p10 = por %p747_p7, %p746_p5 }
  0x16   : > { %p741_p0 = pnand %p739_p13, %p729_p12 }
  0x18   : > { %p742_p3 = pneg %p741_p0 }
  0x1a   : > { %p749_p2 = pnand %p748_p10, %p742_p3 }
  0x1c   : > { %752 = shalt.err (!%p749_p2)
}
  0x1d   : > { %s852_s28 = smov 128   ;;  %s853_s29 = smov 8  }
  0x1e   : > { %677 = dma.hbm_to_vmem [thread:$0]  (!%p927_p11), %s1078_s1, 4096, %s132_s22, [#allocation6], %s852_s28, %s852_s28, %s853_s29  }
  0x1f   : > { %p25_p2 = scmp.eq.s32.totalorder %s24_s26, 0  ;;  %p34_p9 = scmp.ne.s32.totalorder %s845_s14, %s841_s13 }
  0x20   : > { %p35_p10 = scmp.eq.s32.totalorder %s849_s15, 0  ;;  %p687_p12 = scmp.lt.s32.totalorder %s849_s15, 2 }
  0x21   : > { %s952_s5 = scalar_select %p25_p2, %s845_s14, %s27_s25  }
  0x22   : > { %p36_p13 = por %p35_p10, %p34_p9  ;;  %p1089_p0 = scmp.eq.s32.totalorder %s899_s16, 1 }
  0x23   : > { %s148_s7 = sand.u32 1, %s845_s14   ;;  %s548_s8 = sshll.u32 %s849_s15, 9 }
  0x24   : > { %p956_p3 = por %p1089_p0, %p34_p9  ;;  %s533_s9 = sshll.u32 %s148_s7, 5 }
  0x25   : > { %s965_s17 = scalar_lea.hbm %s1077_s0, %s548_s8  ;;  %s152_s21 = scalar_lea.vmem [#allocation2], %s533_s9 }
  0x26   : > { %s1090_s6 = scalar_select %p956_p3, 1, 0 }
  0x27   : > { %s159_s22 = sshll.u32 %s152_s21, 4  ;;  %p967_p11 = pnand %p687_p12, %p36_p13  ;;  %s971_s22 = int_to_ptr.vmem [resolvable:$true] %s159_s22 }
  0x28   : > { %s973_s25 = scalar_lea.sflag [#allocation3], %s148_s7  ;;  %s753_s26 = scalar_lea.hbm %s965_s17, 512 }
  0x29   : > { %p754_p5 = scmp.ne.s32.totalorder %s965_s17, %s753_s26  ;;  %p755_p7 = pneg %p967_p11 }
  0x2a   : > { %s758_s4 = scalar_lea.hbm %s1077_s0, 1024  ;;  %p759_p10 = scmp.lt.s32.totalorder %s965_s17, %s1077_s0 }
  0x2b   : > { %p756_p2 = pnand %p755_p7, %p754_p5  ;;  %p760_p12 = scmp.lt.s32.totalorder %s758_s4, %s753_s26 }
  0x2d   : > { %p757_p9 = pneg %p756_p2  ;;  %p761_p13 = por %p760_p12, %p759_p10 }
  0x2f   : > { %p762_p0 = pnand %p761_p13, %p757_p9 }
  0x31   : > { %765 = shalt.err (!%p762_p0)
}
  0x32   : > { %s766_s7 = scalar_lea.vmem %s971_s22, 512  ;;  %s854_s10 = smov [#allocation2]  }
  0x33   : > { %p767_p1 = scmp.ne.s32.totalorder %s971_s22, %s766_s7  ;;  %s771_s11 = sshll.u32 %s854_s10, 4  ;;  %s772_s11 = int_to_ptr.vmem [resolvable:$false] %s771_s11 }
  0x34   : > { %s773_s21 = scalar_lea.vmem %s772_s11, 1024  ;;  %p774_p2 = scmp.lt.s32.totalorder %s971_s22, %s772_s11 }
  0x35   : > { %p769_p6 = pnand %p767_p1, %p755_p7  ;;  %p775_p3 = scmp.lt.s32.totalorder %s773_s21, %s766_s7 }
  0x37   : > { %p770_p5 = pneg %p769_p6  ;;  %p776_p4 = por %p775_p3, %p774_p2 }
  0x39   : > { %p777_p8 = pnand %p776_p4, %p770_p5 }
  0x3b   : > { %780 = shalt.err (!%p777_p8)
}
  0x3c   : > { %681 = dma.hbm_to_vmem [thread:$0]  (!%p967_p11), %s965_s17, 512, %s971_s22, %s973_s25, %s852_s28, %s852_s28, %s853_s29  }
  0x3d   : > { %p1092_p1 = scmp.ne.s32.totalorder %s1087_s20, 0 }
  0x3e   : > { %s1000_s26 = sand.u32 (!%p1092_p1), 1, %s841_s13   ;;  %p1093_p4 = scmp.ne.s32.totalorder (!%p1092_p1), %s1085_s18, 0 }
  0x3f   : > { %171 = sbr.rel (%p1092_p1) target bundleno = 518 (0x206), region = 32  ;;  %s537_s27 = sshll.u32 (!%p1092_p1), %s1000_s26, 5 }
  0x40   : > { %s174_s30 = scalar_lea.sflag (!%p1092_p1), [#allocation3], %s1000_s26  ;;  %s1006_s23 = scalar_lea.vmem (!%p1092_p1), [#allocation2], %s537_s27 }
  0x44   : > { %824 = dma.done.wait (%p1093_p4), %s174_s30, 512  }
  0x45   : > { %826 = vsyncadd (%p1093_p4), %s174_s30, 4294966784  ;;  %p1094_p6 = scmp.eq.s32.totalorder %s899_s16, 0 }
  0x47   : > { %828 = dma.done.wait (%p1094_p6), [#allocation6], 4096   ;;  %p1095_p8 = pmov %p1094_p6 }
  0x48   : > { %v225_v0 = vld [vmem:[#allocation5 + $0x78] sm:$0xff]  ;;  %v224_v1 = vld [vmem:[#allocation5 + $0x70] sm:$0xff]  ;;  %v223_v2 = vld [vmem:[#allocation5 + $0x68] sm:$0xff]  ;;  %s203_s17 = scalar_lea.vmem [#allocation7], %s537_s27  ;;  %s549_s25 = sshll.u32 %s899_s16, 9 }
  0x49   : > { %830 = vsyncadd (%p1095_p8), [#allocation6], 4294963200  ;;  %590 = vmatprep.subr.mxu0 %v225_v0  ;;  %v222_v3 = vld [vmem:[#allocation5 + $0x60] sm:$0xff]  ;;  %v221_v5 = vld [vmem:[#allocation5 + $0x58] sm:$0xff]  ;;  %s446_s22 = sshll.u32 %s203_s17, 4  ;;  %s1034_s9 = scalar_lea.hbm %s1080_s3, %s549_s25  ;;  %s1029_s22 = int_to_ptr.vmem [resolvable:$true] %s446_s22 }
  0x4a   : > { %591 = vmatpush3.msra.mxu0 %v225_v0  ;;  %v206_v4 = vld [vmem:[%s1006_s23] sm:$0xff]  ;;  %v334_v6 = vld [vmem:[#allocation5 + $0xf8] sm:$0xff]  ;;  %v333_v7 = vld [vmem:[#allocation5 + $0xf0] sm:$0xff]  ;;  %s433_s7 = scalar_lea.sflag [#allocation4], %s1000_s26  ;;  %s781_s10 = scalar_lea.vmem %s1029_s22, 512 }
  0x4b   : > { %592 = vmatprep.subr.mxu0 %v224_v1  ;;  %622 = vmatprep.mubr.f32.mxu0 %v206_v4  ;;  %v220_v8 = vld [vmem:[#allocation5 + $0x50] sm:$0xff]  ;;  %v332_v9 = vld [vmem:[#allocation5 + $0xe8] sm:$0xff]  ;;  %v331_v11 = vld [vmem:[#allocation5 + $0xe0] sm:$0xff]  ;;  %p782_p3 = scmp.ne.s32.totalorder %s1029_s22, %s781_s10  ;;  %p1096_p11 = scmp.ne.s32.totalorder %s1090_s6, 0 }
  0x4c   : > { %593 = vmatpush3.msra.mxu0 %v224_v1  ;;  %628 = vmatprep.subr.mxu1 %v334_v6  ;;  %v219_v10 = vld [vmem:[#allocation5 + $0x48] sm:$0xff]  ;;  %v218_v12 = vld [vmem:[#allocation5 + $0x40] sm:$0xff]  ;;  %v330_v13 = vld [vmem:[#allocation5 + $0xd8] sm:$0xff]  ;;  %s855_s16 = smov [#allocation7]  }
  0x4d   : > { %594 = vmatprep.subr.mxu0 %v223_v2  ;;  %629 = vmatpush3.msra.mxu1 %v334_v6  ;;  %v217_v14 = vld [vmem:[#allocation5 + $0x38] sm:$0xff]  ;;  %v329_v15 = vld [vmem:[#allocation5 + $0xd0] sm:$0xff]  ;;  %v328_v17 = vld [vmem:[#allocation5 + $0xc8] sm:$0xff]  ;;  %p783_p7 = pnand %p782_p3, %p1096_p11  ;;  %s785_s11 = sshll.u32 %s855_s16, 4  ;;  %s786_s11 = int_to_ptr.vmem [resolvable:$false] %s785_s11 }
  0x4e   : > { %595 = vmatpush3.msra.mxu0 %v223_v2  ;;  %630 = vmatprep.subr.mxu1 %v333_v7  ;;  %v216_v16 = vld [vmem:[#allocation5 + $0x30] sm:$0xff]  ;;  %v215_v18 = vld [vmem:[#allocation5 + $0x28] sm:$0xff]  ;;  %v327_v19 = vld [vmem:[#allocation5 + $0xc0] sm:$0xff]  ;;  %s787_s21 = scalar_lea.vmem %s786_s11, 1024  ;;  %p788_p10 = scmp.lt.s32.totalorder %s1029_s22, %s786_s11 }
  0x4f   : > { %596 = vmatprep.subr.mxu0 %v222_v3  ;;  %631 = vmatpush3.msra.mxu1 %v333_v7  ;;  %v214_v20 = vld [vmem:[#allocation5 + $0x20] sm:$0xff]  ;;  %v326_v21 = vld [vmem:[#allocation5 + $0xb8] sm:$0xff]  ;;  %v325_v23 = vld [vmem:[#allocation5 + $0xb0] sm:$0xff]  ;;  %p784_p9 = pneg %p783_p7  ;;  %p789_p12 = scmp.lt.s32.totalorder %s787_s21, %s781_s10 }
  0x50   : > { %597 = vmatpush3.msra.mxu0 %v222_v3  ;;  %632 = vmatprep.subr.mxu1 %v332_v9  ;;  %v213_v22 = vld [vmem:[#allocation5 + $0x18] sm:$0xff]  ;;  %v212_v24 = vld [vmem:[#allocation5 + $0x10] sm:$0xff]  ;;  %v324_v25 = vld [vmem:[#allocation5 + $0xa8] sm:$0xff] }
  0x51   : > { %598 = vmatprep.subr.mxu0 %v221_v5  ;;  %633 = vmatpush3.msra.mxu1 %v332_v9  ;;  %v211_v26 = vld [vmem:[#allocation5 + $0x8] sm:$0xff]  ;;  %v323_v27 = vld [vmem:[#allocation5 + $0xa0] sm:$0xff]  ;;  %v322_v29 = vld [vmem:[#allocation5 + $0x98] sm:$0xff]  ;;  %p790_p13 = por %p789_p12, %p788_p10 }
  0x52   : > { %599 = vmatpush3.msra.mxu0 %v221_v5  ;;  %634 = vmatprep.subr.mxu1 %v331_v11  ;;  %v210_v28 = vld [vmem:[#allocation5] sm:$0xff]  ;;  %v207_v30 = vld [vmem:[%s1006_s23 + $0x8] sm:$0xff]  ;;  %v208_v31 = vld [vmem:[%s1006_s23 + $0x10] sm:$0xff] }
  0x53   : > { %600 = vmatprep.subr.mxu0 %v220_v8  ;;  %635 = vmatpush3.msra.mxu1 %v331_v11  ;;  %v209_v32 = vld [vmem:[%s1006_s23 + $0x18] sm:$0xff]  ;;  %v321_v33 = vld [vmem:[#allocation5 + $0x90] sm:$0xff]  ;;  %v320_v34 = vld [vmem:[#allocation5 + $0x88] sm:$0xff]  ;;  %p791_p0 = pnand %p790_p13, %p784_p9 }
  0x54   : > { %601 = vmatpush3.msra.mxu0 %v220_v8  ;;  %636 = vmatprep.subr.mxu1 %v330_v13  ;;  %v319_v35 = vld [vmem:[#allocation5 + $0x80] sm:$0xff] }
  0x55   : > { %602 = vmatprep.subr.mxu0 %v219_v10  ;;  %637 = vmatpush3.msra.mxu1 %v330_v13  ;;  %v540_v37 = vld [vmem:[%s1079_s2] ss:$0 sm:$0xff]  ;;  %v542_v45 = vld [vmem:[%s1079_s2 + $0x1] ss:$0 sm:$0xff] }
  0x56   : > { %603 = vmatpush3.msra.mxu0 %v219_v10  ;;  %638 = vmatprep.subr.mxu1 %v329_v15 }
  0x57   : > { %604 = vmatprep.subr.mxu0 %v218_v12  ;;  %639 = vmatpush3.msra.mxu1 %v329_v15 }
  0x58   : > { %605 = vmatpush3.msra.mxu0 %v218_v12  ;;  %640 = vmatprep.subr.mxu1 %v328_v17 }
  0x59   : > { %606 = vmatprep.subr.mxu0 %v217_v14  ;;  %641 = vmatpush3.msra.mxu1 %v328_v17 }
  0x5a   : > { %607 = vmatpush3.msra.mxu0 %v217_v14  ;;  %642 = vmatprep.subr.mxu1 %v327_v19 }
  0x5b   : > { %608 = vmatprep.subr.mxu0 %v216_v16  ;;  %643 = vmatpush3.msra.mxu1 %v327_v19 }
  0x5c   : > { %609 = vmatpush3.msra.mxu0 %v216_v16  ;;  %644 = vmatprep.subr.mxu1 %v326_v21 }
  0x5d   : > { %610 = vmatprep.subr.mxu0 %v215_v18  ;;  %645 = vmatpush3.msra.mxu1 %v326_v21 }
  0x5e   : > { %611 = vmatpush3.msra.mxu0 %v215_v18  ;;  %646 = vmatprep.subr.mxu1 %v325_v23 }
  0x5f   : > { %612 = vmatprep.subr.mxu0 %v214_v20  ;;  %647 = vmatpush3.msra.mxu1 %v325_v23 }
  0x60   : > { %613 = vmatpush3.msra.mxu0 %v214_v20  ;;  %648 = vmatprep.subr.mxu1 %v324_v25 }
  0x61   : > { %614 = vmatprep.subr.mxu0 %v213_v22  ;;  %649 = vmatpush3.msra.mxu1 %v324_v25 }
  0x62   : > { %615 = vmatpush3.msra.mxu0 %v213_v22  ;;  %650 = vmatprep.subr.mxu1 %v323_v27 }
  0x63   : > { %616 = vmatprep.subr.mxu0 %v212_v24  ;;  %651 = vmatpush3.msra.mxu1 %v323_v27 }
  0x64   : > { %617 = vmatpush3.msra.mxu0 %v212_v24  ;;  %652 = vmatprep.subr.mxu1 %v322_v29 }
  0x65   : > { %618 = vmatprep.subr.mxu0 %v211_v26  ;;  %653 = vmatpush3.msra.mxu1 %v322_v29 }
  0x66   : > { %619 = vmatpush3.msra.mxu0 %v211_v26  ;;  %654 = vmatprep.subr.mxu1 %v321_v33 }
  0x67   : > { %620 = vmatprep.subr.mxu0 %v210_v28  ;;  %655 = vmatpush3.msra.mxu1 %v321_v33 }
  0x68   : > { %621 = vmatpush3.msra.mxu0 %v210_v28  ;;  %656 = vmatprep.subr.mxu1 %v320_v34 }
  0x69   : > { %623 = vmatmul.mubr.f32.vlgmr.msra.gmra.mxu0 %v207_v30  ;;  %657 = vmatpush3.msra.mxu1 %v320_v34 }
  0x6a   : > { %625 = vmatprep.mubr.f32.mxu0 %v208_v31  ;;  %658 = vmatprep.subr.mxu1 %v319_v35 }
  0x6b   : > { %659 = vmatpush3.msra.mxu1 %v319_v35 }
  0x6d   : > { %626 = vmatmul.mubr.f32.gmra.mxu0 %v209_v32 }
 0x129   : > { %v624_v36 = vpop.f32.mrf.mxu0 }
 0x12a   : > { %v305_v40 = vadd.f32 %v624_v36, %v540_v37 }
 0x12b   : > { %v299_v38 = vpop.f32.mrf.mxu0 }
 0x12c   : > { %v300_v39 = vadd.f32 %v540_v37, %v299_v38 }
 0x12d   : > { %v627_v41 = vpop.f32.mrf.mxu0 }
 0x12e   : > { %660 = vmatprep.mubr.f32.mxu1 %v300_v39  ;;  %v315_v44 = vadd.f32 %v627_v41, %v540_v37 }
 0x12f   : > { %v309_v42 = vpop.f32.mrf.mxu0  ;;  %661 = vmatmul.mubr.f32.vlgmr.msra.gmra.mxu1 %v305_v40 }
 0x130   : > { %v310_v43 = vadd.f32 %v540_v37, %v309_v42 }
 0x132   : > { %663 = vmatprep.mubr.f32.mxu1 %v310_v43 }
 0x133   : > { %664 = vmatmul.mubr.f32.gmra.mxu1 %v315_v44 }
 0x1ef   : > { %v662_v46 = vpop.f32.mrf.mxu1 }
 0x1f0   : > { %v415_v47 = vadd.f32 %v662_v46, %v542_v45 }
 0x1f1   : > { %v409_v48 = vpop.f32.mrf.mxu1 }
 0x1f2   : > { %429 = vst [vmem:[%s203_s17 + $0x8] sm:$0xff] %v415_v47  ;;  %v410_v49 = vadd.f32 %v542_v45, %v409_v48 }
 0x1f3   : > { %v665_v50 = vpop.f32.mrf.mxu1 }
 0x1f4   : > { %428 = vst [vmem:[%s203_s17] sm:$0xff] %v410_v49  ;;  %v425_v51 = vadd.f32 %v665_v50, %v542_v45 }
 0x1f5   : > { %v419_v52 = vpop.f32.mrf.mxu1 }
 0x1f6   : > { %431 = vst [vmem:[%s203_s17 + $0x18] sm:$0xff] %v425_v51  ;;  %v420_v53 = vadd.f32 %v542_v45, %v419_v52 }
 0x1f8   : > { %430 = vst [vmem:[%s203_s17 + $0x10] sm:$0xff] %v420_v53 }
 0x1f9   : > { %794 = shalt.err (!%p791_p0)
}
 0x1fa   : > { %s795_s27 = scalar_lea.hbm %s1034_s9, 512  ;;  %s799_s18 = scalar_lea.hbm %s1080_s3, 1024 }
 0x1fb   : > { %p796_p5 = scmp.ne.s32.totalorder %s1034_s9, %s795_s27  ;;  %p800_p4 = scmp.lt.s32.totalorder %s1034_s9, %s1080_s3 }
 0x1fc   : > { %p801_p6 = scmp.lt.s32.totalorder %s799_s18, %s795_s27 }
 0x1fd   : > { %p797_p2 = pnand %p796_p5, %p1096_p11 }
 0x1fe   : > { %p802_p8 = por %p801_p6, %p800_p4 }
 0x1ff   : > { %p798_p1 = pneg %p797_p2 }
 0x201   : > { %p803_p3 = pnand %p802_p8, %p798_p1 }
 0x203   : > { %806 = shalt.err (!%p803_p3)
}
 0x204   : > { %s856_s29 = smov 128   ;;  %s857_s17 = smov 8  }
 0x205   : > { %672 = dma.vmem_to_hbm [thread:$0]  (%p1096_p11), %s1029_s22, 512, %s1034_s9, %s433_s7, %s856_s29, %s856_s29, %s857_s17  }
 0x206 PF: > { %s461_s25 = sand.u32 1, %s837_s12   ;;  %p1097_p7 = scmp.ne.s32.totalorder %s1086_s19, 0 }
 0x207   : > { %p1098_p9 = scmp.ge.s32.totalorder %s849_s15, 2  ;;  %s462_s4 = scalar_lea.sflag [#allocation4], %s461_s25 }
 0x209   : > { %p683_p10 = pnand %p1098_p9, %p1097_p7 }
 0x20b   : > { %p684_p12 = pneg %p683_p10 }
 0x20d   : > { %832 = dma.done.wait (%p684_p12), %s462_s4, 512  }
 0x20e   : > { %834 = vsyncadd (%p684_p12), %s462_s4, 4294966784  ;;  %p17_p13 = scmp.ge.s32.totalorder %s932_s24, 4   ;;  %s1099_s12 = smov %s841_s13 }
 0x20f   : > { %s1100_s13 = smov %s845_s14  ;;  %s1101_s14 = smov %s952_s5 }
 0x210   : > { %s1102_s15 = smov %s932_s24  ;;  %19 = sbr.rel (!%p17_p13) target bundleno = 6 (0x6), region = 83 }
 0x215   :  { %467 = vsyncpa [#allocation3], 1 }
 0x216   :  { %469 = vsyncpa [#allocation3 + $0x1], 1 }
 0x217   :  { %470 = vsyncpa [#allocation6], 1 }
 0x218   :  { %471 = vsyncpa [#allocation4], 1 }
 0x219   :  { %473 = vsyncpa [#allocation4 + $0x1], 1 }

// kernel: tpu_custom_call.1
= control target key start
LH: loop header
LB: loop body
LE: loop exit
PB: predicated region body
PF: predicated region fallthrough
CT: control target
= control target key end

     0   :  { %8 = vsyncpa [#allocation3], 0  ;;  %s1077_s0 = inlined_call_operand.hbm [shape: f32[64,128], index: 0, kind: input, shape index: {}]   ;;  %s1078_s1 = inlined_call_operand.hbm [shape: f32[2,128,128], index: 1, kind: input, shape index: {}]   ;;  %s1079_s2 = inlined_call_operand.vmem [shape: f32[2,1,128], index: 2, kind: input, shape index: {}]   ;;  %s1080_s3 = inlined_call_operand.hbm [shape: f32[64,128], index: 3, kind: output, shape index: {}]  }
   0x1   :  { %10 = vsyncpa [#allocation3 + $0x1], 0 }
   0x2   :  { %11 = vsyncpa [#allocation6], 0 }
   0x3   :  { %12 = vsyncpa [#allocation4], 0 }
   0x4   :  { %14 = vsyncpa [#allocation4 + $0x1], 0  ;;  %s878_s12 = smov 0   ;;  %s880_s13 = smov 0  }
   0x5   :  { %s882_s14 = smov 0   ;;  %s884_s15 = smov 0  }
   0x6 LB: > { %s899_s16 = sadd.s32 4294967295, %s849_s15   ;;  %s529_s17 = sadd.s32 4294967294, %s849_s15   ;;  %s849_s15 = sphi %s884_s15, %s1102_s15   ;;  %s845_s14 = sphi %s882_s14, %s1101_s14   ;;  %s841_s13 = sphi %s880_s13, %s1100_s13   ;;  %s837_s12 = sphi %s878_s12, %s1099_s12  }
   0x7   : > { %p40_p0 = scmp.ne.s32.totalorder %s841_s13, %s837_s12  ;;  %p1081_p1 = scmp.eq.s32.totalorder %s899_s16, 0 }
   0x8   : > { %p112_p3 = scmp.eq.s32.totalorder %s529_s17, 1  ;;  %p530_p5 = scmp.ge.s32.totalorder %s849_s15, 1 }
   0x9   : > { %p908_p4 = por %p1081_p1, %p40_p0  ;;  %p119_p7 = scmp.lt.s32.totalorder %s849_s15, 3 }
   0xa   : > { %p913_p6 = por %p112_p3, %p40_p0  ;;  %s851_s21 = smov [#allocation5]  }
   0xb   : > { %s1085_s18 = scalar_select %p908_p4, 1, 0 }
   0xc   : > { %s1086_s19 = scalar_select %p913_p6, 1, 0 }
   0xd   : > { %p918_p8 = pnand %p530_p5, %p119_p7  ;;  %s131_s22 = sshll.u32 %s851_s21, 4  ;;  %s132_s22 = int_to_ptr.vmem [resolvable:$true] %s131_s22 }
   0xe   : > { %s932_s24 = sadd.s32 1, %s849_s15   ;;  %s27_s25 = sadd.s32 1, %s845_s14 }
   0xf   : > { %s1087_s20 = scalar_select %p918_p8, 1, 0 }
  0x10   : > { %p674_p9 = pneg %p918_p8  ;;  %s24_s26 = ssub.s32 %s849_s15, %s932_s24 }
  0x11   : > { %s738_s27 = scalar_lea.vmem %s132_s22, 4096  ;;  %p746_p5 = scmp.lt.s32.totalorder %s132_s22, %s132_s22 }
  0x12   : > { %p927_p11 = pnand %p674_p9, %p1081_p1  ;;  %p739_p13 = scmp.ne.s32.totalorder %s132_s22, %s738_s27 }
  0x13   : > { %p747_p7 = scmp.lt.s32.totalorder %s738_s27, %s738_s27 }
  0x14   : > { %p729_p12 = pneg %p927_p11 }
  0x15   : > { %p748_p10 = por %p747_p7, %p746_p5 }
  0x16   : > { %p741_p0 = pnand %p739_p13, %p729_p12 }
  0x18   : > { %p742_p3 = pneg %p741_p0 }
  0x1a   : > { %p749_p2 = pnand %p748_p10, %p742_p3 }
  0x1c   : > { %752 = shalt.err (!%p749_p2)
}
  0x1d   : > { %s852_s28 = smov 128   ;;  %s853_s29 = smov 8  }
  0x1e   : > { %677 = dma.hbm_to_vmem [thread:$0]  (!%p927_p11), %s1078_s1, 4096, %s132_s22, [#allocation6], %s852_s28, %s852_s28, %s853_s29  }
  0x1f   : > { %p25_p2 = scmp.eq.s32.totalorder %s24_s26, 0  ;;  %p34_p9 = scmp.ne.s32.totalorder %s845_s14, %s841_s13 }
  0x20   : > { %p35_p10 = scmp.eq.s32.totalorder %s849_s15, 0  ;;  %p687_p12 = scmp.lt.s32.totalorder %s849_s15, 2 }
  0x21   : > { %s952_s5 = scalar_select %p25_p2, %s845_s14, %s27_s25  }
  0x22   : > { %p36_p13 = por %p35_p10, %p34_p9  ;;  %p1089_p0 = scmp.eq.s32.totalorder %s899_s16, 1 }
  0x23   : > { %s148_s7 = sand.u32 1, %s845_s14   ;;  %s548_s8 = sshll.u32 %s849_s15, 9 }
  0x24   : > { %p956_p3 = por %p1089_p0, %p34_p9  ;;  %s533_s9 = sshll.u32 %s148_s7, 5 }
  0x25   : > { %s965_s17 = scalar_lea.hbm %s1077_s0, %s548_s8  ;;  %s152_s21 = scalar_lea.vmem [#allocation2], %s533_s9 }
  0x26   : > { %s1090_s6 = scalar_select %p956_p3, 1, 0 }
  0x27   : > { %s159_s22 = sshll.u32 %s152_s21, 4  ;;  %p967_p11 = pnand %p687_p12, %p36_p13  ;;  %s971_s22 = int_to_ptr.vmem [resolvable:$true] %s159_s22 }
  0x28   : > { %s973_s25 = scalar_lea.sflag [#allocation3], %s148_s7  ;;  %s753_s26 = scalar_lea.hbm %s965_s17, 512 }
  0x29   : > { %p754_p5 = scmp.ne.s32.totalorder %s965_s17, %s753_s26  ;;  %p755_p7 = pneg %p967_p11 }
  0x2a   : > { %s758_s4 = scalar_lea.hbm %s1077_s0, 1024  ;;  %p759_p10 = scmp.lt.s32.totalorder %s965_s17, %s1077_s0 }
  0x2b   : > { %p756_p2 = pnand %p755_p7, %p754_p5  ;;  %p760_p12 = scmp.lt.s32.totalorder %s758_s4, %s753_s26 }
  0x2d   : > { %p757_p9 = pneg %p756_p2  ;;  %p761_p13 = por %p760_p12, %p759_p10 }
  0x2f   : > { %p762_p0 = pnand %p761_p13, %p757_p9 }
  0x31   : > { %765 = shalt.err (!%p762_p0)
}
  0x32   : > { %s766_s7 = scalar_lea.vmem %s971_s22, 512  ;;  %s854_s10 = smov [#allocation2]  }
  0x33   : > { %p767_p1 = scmp.ne.s32.totalorder %s971_s22, %s766_s7  ;;  %s771_s11 = sshll.u32 %s854_s10, 4  ;;  %s772_s11 = int_to_ptr.vmem [resolvable:$false] %s771_s11 }
  0x34   : > { %s773_s21 = scalar_lea.vmem %s772_s11, 1024  ;;  %p774_p2 = scmp.lt.s32.totalorder %s971_s22, %s772_s11 }
  0x35   : > { %p769_p6 = pnand %p767_p1, %p755_p7  ;;  %p775_p3 = scmp.lt.s32.totalorder %s773_s21, %s766_s7 }
  0x37   : > { %p770_p5 = pneg %p769_p6  ;;  %p776_p4 = por %p775_p3, %p774_p2 }
  0x39   : > { %p777_p8 = pnand %p776_p4, %p770_p5 }
  0x3b   : > { %780 = shalt.err (!%p777_p8)
}
  0x3c   : > { %681 = dma.hbm_to_vmem [thread:$0]  (!%p967_p11), %s965_s17, 512, %s971_s22, %s973_s25, %s852_s28, %s852_s28, %s853_s29  }
  0x3d   : > { %p1092_p1 = scmp.ne.s32.totalorder %s1087_s20, 0 }
  0x3e   : > { %s1000_s26 = sand.u32 (!%p1092_p1), 1, %s841_s13   ;;  %p1093_p4 = scmp.ne.s32.totalorder (!%p1092_p1), %s1085_s18, 0 }
  0x3f   : > { %171 = sbr.rel (%p1092_p1) target bundleno = 518 (0x206), region = 32  ;;  %s537_s27 = sshll.u32 (!%p1092_p1), %s1000_s26, 5 }
  0x40   : > { %s174_s30 = scalar_lea.sflag (!%p1092_p1), [#allocation3], %s1000_s26  ;;  %s1006_s23 = scalar_lea.vmem (!%p1092_p1), [#allocation2], %s537_s27 }
  0x44   : > { %824 = dma.done.wait (%p1093_p4), %s174_s30, 512  }
  0x45   : > { %826 = vsyncadd (%p1093_p4), %s174_s30, 4294966784  ;;  %p1094_p6 = scmp.eq.s32.totalorder %s899_s16, 0 }
  0x47   : > { %828 = dma.done.wait (%p1094_p6), [#allocation6], 4096   ;;  %p1095_p8 = pmov %p1094_p6 }
  0x48   : > { %v225_v0 = vld [vmem:[#allocation5 + $0x78] sm:$0xff]  ;;  %v224_v1 = vld [vmem:[#allocation5 + $0x70] sm:$0xff]  ;;  %v223_v2 = vld [vmem:[#allocation5 + $0x68] sm:$0xff]  ;;  %s203_s17 = scalar_lea.vmem [#allocation7], %s537_s27  ;;  %s549_s25 = sshll.u32 %s899_s16, 9 }
  0x49   : > { %830 = vsyncadd (%p1095_p8), [#allocation6], 4294963200  ;;  %590 = vmatprep.subr.mxu0 %v225_v0  ;;  %v222_v3 = vld [vmem:[#allocation5 + $0x60] sm:$0xff]  ;;  %v221_v5 = vld [vmem:[#allocation5 + $0x58] sm:$0xff]  ;;  %s446_s22 = sshll.u32 %s203_s17, 4  ;;  %s1034_s9 = scalar_lea.hbm %s1080_s3, %s549_s25  ;;  %s1029_s22 = int_to_ptr.vmem [resolvable:$true] %s446_s22 }
  0x4a   : > { %591 = vmatpush3.msra.mxu0 %v225_v0  ;;  %v206_v4 = vld [vmem:[%s1006_s23] sm:$0xff]  ;;  %v334_v6 = vld [vmem:[#allocation5 + $0xf8] sm:$0xff]  ;;  %v333_v7 = vld [vmem:[#allocation5 + $0xf0] sm:$0xff]  ;;  %s433_s7 = scalar_lea.sflag [#allocation4], %s1000_s26  ;;  %s781_s10 = scalar_lea.vmem %s1029_s22, 512 }
  0x4b   : > { %592 = vmatprep.subr.mxu0 %v224_v1  ;;  %622 = vmatprep.mubr.f32.mxu0 %v206_v4  ;;  %v220_v8 = vld [vmem:[#allocation5 + $0x50] sm:$0xff]  ;;  %v332_v9 = vld [vmem:[#allocation5 + $0xe8] sm:$0xff]  ;;  %v331_v11 = vld [vmem:[#allocation5 + $0xe0] sm:$0xff]  ;;  %p782_p3 = scmp.ne.s32.totalorder %s1029_s22, %s781_s10  ;;  %p1096_p11 = scmp.ne.s32.totalorder %s1090_s6, 0 }
  0x4c   : > { %593 = vmatpush3.msra.mxu0 %v224_v1  ;;  %628 = vmatprep.subr.mxu1 %v334_v6  ;;  %v219_v10 = vld [vmem:[#allocation5 + $0x48] sm:$0xff]  ;;  %v218_v12 = vld [vmem:[#allocation5 + $0x40] sm:$0xff]  ;;  %v330_v13 = vld [vmem:[#allocation5 + $0xd8] sm:$0xff]  ;;  %s855_s16 = smov [#allocation7]  }
  0x4d   : > { %594 = vmatprep.subr.mxu0 %v223_v2  ;;  %629 = vmatpush3.msra.mxu1 %v334_v6  ;;  %v217_v14 = vld [vmem:[#allocation5 + $0x38] sm:$0xff]  ;;  %v329_v15 = vld [vmem:[#allocation5 + $0xd0] sm:$0xff]  ;;  %v328_v17 = vld [vmem:[#allocation5 + $0xc8] sm:$0xff]  ;;  %p783_p7 = pnand %p782_p3, %p1096_p11  ;;  %s785_s11 = sshll.u32 %s855_s16, 4  ;;  %s786_s11 = int_to_ptr.vmem [resolvable:$false] %s785_s11 }
  0x4e   : > { %595 = vmatpush3.msra.mxu0 %v223_v2  ;;  %630 = vmatprep.subr.mxu1 %v333_v7  ;;  %v216_v16 = vld [vmem:[#allocation5 + $0x30] sm:$0xff]  ;;  %v215_v18 = vld [vmem:[#allocation5 + $0x28] sm:$0xff]  ;;  %v327_v19 = vld [vmem:[#allocation5 + $0xc0] sm:$0xff]  ;;  %s787_s21 = scalar_lea.vmem %s786_s11, 1024  ;;  %p788_p10 = scmp.lt.s32.totalorder %s1029_s22, %s786_s11 }
  0x4f   : > { %596 = vmatprep.subr.mxu0 %v222_v3  ;;  %631 = vmatpush3.msra.mxu1 %v333_v7  ;;  %v214_v20 = vld [vmem:[#allocation5 + $0x20] sm:$0xff]  ;;  %v326_v21 = vld [vmem:[#allocation5 + $0xb8] sm:$0xff]  ;;  %v325_v23 = vld [vmem:[#allocation5 + $0xb0] sm:$0xff]  ;;  %p784_p9 = pneg %p783_p7  ;;  %p789_p12 = scmp.lt.s32.totalorder %s787_s21, %s781_s10 }
  0x50   : > { %597 = vmatpush3.msra.mxu0 %v222_v3  ;;  %632 = vmatprep.subr.mxu1 %v332_v9  ;;  %v213_v22 = vld [vmem:[#allocation5 + $0x18] sm:$0xff]  ;;  %v212_v24 = vld [vmem:[#allocation5 + $0x10] sm:$0xff]  ;;  %v324_v25 = vld [vmem:[#allocation5 + $0xa8] sm:$0xff] }
  0x51   : > { %598 = vmatprep.subr.mxu0 %v221_v5  ;;  %633 = vmatpush3.msra.mxu1 %v332_v9  ;;  %v211_v26 = vld [vmem:[#allocation5 + $0x8] sm:$0xff]  ;;  %v323_v27 = vld [vmem:[#allocation5 + $0xa0] sm:$0xff]  ;;  %v322_v29 = vld [vmem:[#allocation5 + $0x98] sm:$0xff]  ;;  %p790_p13 = por %p789_p12, %p788_p10 }
  0x52   : > { %599 = vmatpush3.msra.mxu0 %v221_v5  ;;  %634 = vmatprep.subr.mxu1 %v331_v11  ;;  %v210_v28 = vld [vmem:[#allocation5] sm:$0xff]  ;;  %v207_v30 = vld [vmem:[%s1006_s23 + $0x8] sm:$0xff]  ;;  %v208_v31 = vld [vmem:[%s1006_s23 + $0x10] sm:$0xff] }
  0x53   : > { %600 = vmatprep.subr.mxu0 %v220_v8  ;;  %635 = vmatpush3.msra.mxu1 %v331_v11  ;;  %v209_v32 = vld [vmem:[%s1006_s23 + $0x18] sm:$0xff]  ;;  %v321_v33 = vld [vmem:[#allocation5 + $0x90] sm:$0xff]  ;;  %v320_v34 = vld [vmem:[#allocation5 + $0x88] sm:$0xff]  ;;  %p791_p0 = pnand %p790_p13, %p784_p9 }
  0x54   : > { %601 = vmatpush3.msra.mxu0 %v220_v8  ;;  %636 = vmatprep.subr.mxu1 %v330_v13  ;;  %v319_v35 = vld [vmem:[#allocation5 + $0x80] sm:$0xff] }
  0x55   : > { %602 = vmatprep.subr.mxu0 %v219_v10  ;;  %637 = vmatpush3.msra.mxu1 %v330_v13  ;;  %v540_v37 = vld [vmem:[%s1079_s2] ss:$0 sm:$0xff]  ;;  %v542_v45 = vld [vmem:[%s1079_s2 + $0x1] ss:$0 sm:$0xff] }
  0x56   : > { %603 = vmatpush3.msra.mxu0 %v219_v10  ;;  %638 = vmatprep.subr.mxu1 %v329_v15 }
  0x57   : > { %604 = vmatprep.subr.mxu0 %v218_v12  ;;  %639 = vmatpush3.msra.mxu1 %v329_v15 }
  0x58   : > { %605 = vmatpush3.msra.mxu0 %v218_v12  ;;  %640 = vmatprep.subr.mxu1 %v328_v17 }
  0x59   : > { %606 = vmatprep.subr.mxu0 %v217_v14  ;;  %641 = vmatpush3.msra.mxu1 %v328_v17 }
  0x5a   : > { %607 = vmatpush3.msra.mxu0 %v217_v14  ;;  %642 = vmatprep.subr.mxu1 %v327_v19 }
  0x5b   : > { %608 = vmatprep.subr.mxu0 %v216_v16  ;;  %643 = vmatpush3.msra.mxu1 %v327_v19 }
  0x5c   : > { %609 = vmatpush3.msra.mxu0 %v216_v16  ;;  %644 = vmatprep.subr.mxu1 %v326_v21 }
  0x5d   : > { %610 = vmatprep.subr.mxu0 %v215_v18  ;;  %645 = vmatpush3.msra.mxu1 %v326_v21 }
  0x5e   : > { %611 = vmatpush3.msra.mxu0 %v215_v18  ;;  %646 = vmatprep.subr.mxu1 %v325_v23 }
  0x5f   : > { %612 = vmatprep.subr.mxu0 %v214_v20  ;;  %647 = vmatpush3.msra.mxu1 %v325_v23 }
  0x60   : > { %613 = vmatpush3.msra.mxu0 %v214_v20  ;;  %648 = vmatprep.subr.mxu1 %v324_v25 }
  0x61   : > { %614 = vmatprep.subr.mxu0 %v213_v22  ;;  %649 = vmatpush3.msra.mxu1 %v324_v25 }
  0x62   : > { %615 = vmatpush3.msra.mxu0 %v213_v22  ;;  %650 = vmatprep.subr.mxu1 %v323_v27 }
  0x63   : > { %616 = vmatprep.subr.mxu0 %v212_v24  ;;  %651 = vmatpush3.msra.mxu1 %v323_v27 }
  0x64   : > { %617 = vmatpush3.msra.mxu0 %v212_v24  ;;  %652 = vmatprep.subr.mxu1 %v322_v29 }
  0x65   : > { %618 = vmatprep.subr.mxu0 %v211_v26  ;;  %653 = vmatpush3.msra.mxu1 %v322_v29 }
  0x66   : > { %619 = vmatpush3.msra.mxu0 %v211_v26  ;;  %654 = vmatprep.subr.mxu1 %v321_v33 }
  0x67   : > { %620 = vmatprep.subr.mxu0 %v210_v28  ;;  %655 = vmatpush3.msra.mxu1 %v321_v33 }
  0x68   : > { %621 = vmatpush3.msra.mxu0 %v210_v28  ;;  %656 = vmatprep.subr.mxu1 %v320_v34 }
  0x69   : > { %623 = vmatmul.mubr.f32.vlgmr.msra.gmra.mxu0 %v207_v30  ;;  %657 = vmatpush3.msra.mxu1 %v320_v34 }
  0x6a   : > { %625 = vmatprep.mubr.f32.mxu0 %v208_v31  ;;  %658 = vmatprep.subr.mxu1 %v319_v35 }
  0x6b   : > { %659 = vmatpush3.msra.mxu1 %v319_v35 }
  0x6d   : > { %626 = vmatmul.mubr.f32.gmra.mxu0 %v209_v32 }
 0x129   : > { %v624_v36 = vpop.f32.mrf.mxu0 }
 0x12a   : > { %v305_v40 = vadd.f32 %v624_v36, %v540_v37 }
 0x12b   : > { %v299_v38 = vpop.f32.mrf.mxu0 }
 0x12c   : > { %v300_v39 = vadd.f32 %v540_v37, %v299_v38 }
 0x12d   : > { %v627_v41 = vpop.f32.mrf.mxu0 }
 0x12e   : > { %660 = vmatprep.mubr.f32.mxu1 %v300_v39  ;;  %v315_v44 = vadd.f32 %v627_v41, %v540_v37 }
 0x12f   : > { %v309_v42 = vpop.f32.mrf.mxu0  ;;  %661 = vmatmul.mubr.f32.vlgmr.msra.gmra.mxu1 %v305_v40 }
 0x130   : > { %v310_v43 = vadd.f32 %v540_v37, %v309_v42 }
 0x132   : > { %663 = vmatprep.mubr.f32.mxu1 %v310_v43 }
 0x133   : > { %664 = vmatmul.mubr.f32.gmra.mxu1 %v315_v44 }
 0x1ef   : > { %v662_v46 = vpop.f32.mrf.mxu1 }
 0x1f0   : > { %v415_v47 = vadd.f32 %v662_v46, %v542_v45 }
 0x1f1   : > { %v409_v48 = vpop.f32.mrf.mxu1 }
 0x1f2   : > { %429 = vst [vmem:[%s203_s17 + $0x8] sm:$0xff] %v415_v47  ;;  %v410_v49 = vadd.f32 %v542_v45, %v409_v48 }
 0x1f3   : > { %v665_v50 = vpop.f32.mrf.mxu1 }
 0x1f4   : > { %428 = vst [vmem:[%s203_s17] sm:$0xff] %v410_v49  ;;  %v425_v51 = vadd.f32 %v665_v50, %v542_v45 }
 0x1f5   : > { %v419_v52 = vpop.f32.mrf.mxu1 }
 0x1f6   : > { %431 = vst [vmem:[%s203_s17 + $0x18] sm:$0xff] %v425_v51  ;;  %v420_v53 = vadd.f32 %v542_v45, %v419_v52 }
 0x1f8   : > { %430 = vst [vmem:[%s203_s17 + $0x10] sm:$0xff] %v420_v53 }
 0x1f9   : > { %794 = shalt.err (!%p791_p0)
}
 0x1fa   : > { %s795_s27 = scalar_lea.hbm %s1034_s9, 512  ;;  %s799_s18 = scalar_lea.hbm %s1080_s3, 1024 }
 0x1fb   : > { %p796_p5 = scmp.ne.s32.totalorder %s1034_s9, %s795_s27  ;;  %p800_p4 = scmp.lt.s32.totalorder %s1034_s9, %s1080_s3 }
 0x1fc   : > { %p801_p6 = scmp.lt.s32.totalorder %s799_s18, %s795_s27 }
 0x1fd   : > { %p797_p2 = pnand %p796_p5, %p1096_p11 }
 0x1fe   : > { %p802_p8 = por %p801_p6, %p800_p4 }
 0x1ff   : > { %p798_p1 = pneg %p797_p2 }
 0x201   : > { %p803_p3 = pnand %p802_p8, %p798_p1 }
 0x203   : > { %806 = shalt.err (!%p803_p3)
}
 0x204   : > { %s856_s29 = smov 128   ;;  %s857_s17 = smov 8  }
 0x205   : > { %672 = dma.vmem_to_hbm [thread:$0]  (%p1096_p11), %s1029_s22, 512, %s1034_s9, %s433_s7, %s856_s29, %s856_s29, %s857_s17  }
 0x206 PF: > { %s461_s25 = sand.u32 1, %s837_s12   ;;  %p1097_p7 = scmp.ne.s32.totalorder %s1086_s19, 0 }
 0x207   : > { %p1098_p9 = scmp.ge.s32.totalorder %s849_s15, 2  ;;  %s462_s4 = scalar_lea.sflag [#allocation4], %s461_s25 }
 0x209   : > { %p683_p10 = pnand %p1098_p9, %p1097_p7 }
 0x20b   : > { %p684_p12 = pneg %p683_p10 }
 0x20d   : > { %832 = dma.done.wait (%p684_p12), %s462_s4, 512  }
 0x20e   : > { %834 = vsyncadd (%p684_p12), %s462_s4, 4294966784  ;;  %p17_p13 = scmp.ge.s32.totalorder %s932_s24, 4   ;;  %s1099_s12 = smov %s841_s13 }
 0x20f   : > { %s1100_s13 = smov %s845_s14  ;;  %s1101_s14 = smov %s952_s5 }
 0x210   : > { %s1102_s15 = smov %s932_s24  ;;  %19 = sbr.rel (!%p17_p13) target bundleno = 6 (0x6), region = 83 }
 0x215   :  { %467 = vsyncpa [#allocation3], 1 }
 0x216   :  { %469 = vsyncpa [#allocation3 + $0x1], 1 }
 0x217   :  { %470 = vsyncpa [#allocation6], 1 }
 0x218   :  { %471 = vsyncpa [#allocation4], 1 }
 0x219   :  { %473 = vsyncpa [#allocation4 + $0x1], 1 }

</bundles_post_ra>
